<compile_context>
chip_gen: v7x
topology: tpu7x:2x2x1
jax: 0.10.0
libtpu: 0.0.40
codegen_flags: <defaults>
</compile_context>

<pallas_src>
import jax
import jax.numpy as jnp
from jax import lax
from jax.experimental import pallas as pl
from jax.experimental.pallas import tpu as pltpu

ACTION_RANGE = 2.5
CHUNK = 512        # batch columns processed per in-kernel step (fits in vregs)
SMALL_MAX = 256    # <= this batch size -> single-block fast path


def _mlp_cols(x_rows, w1, b1, w2, b2, w3, b3):
    """x_rows: (ncols, state_dim), batch on rows. Returns (action_dim, ncols).

    fc1 contracts the last dim of both operands (W1 @ X^T), putting the batch on
    the lane axis without an explicit transpose; fc2/fc3 are plain lane-batched
    matmuls; biases are (out, 1) columns broadcast across lanes.
    """
    h1 = lax.dot_general(w1, x_rows, (((1,), (1,)), ((), ())),
                         preferred_element_type=jnp.float32) + b1
    h1 = jnp.maximum(h1, 0.0)
    h2 = jnp.dot(w2, h1, preferred_element_type=jnp.float32) + b2
    h2 = jnp.maximum(h2, 0.0)
    a = jnp.dot(w3, h2, preferred_element_type=jnp.float32) + b3
    return jnp.tanh(a) * ACTION_RANGE


def actor_kernel_small(x_ref, w1_ref, b1_ref, w2_ref, b2_ref, w3_ref, b3_ref, o_ref):
    # Whole problem in one block: x (B, state_dim) -> o (action_dim, B).
    o_ref[...] = _mlp_cols(x_ref[...], w1_ref[...], b1_ref[...], w2_ref[...],
                           b2_ref[...], w3_ref[...], b3_ref[...])


def actor_kernel_tiled(x_ref, w1_ref, b1_ref, w2_ref, b2_ref, w3_ref, b3_ref, o_ref):
    # x_ref: (TB, state_dim) -- contiguous HBM slab, batch on rows.
    # o_ref: (action_dim, TB) -- batch on lanes => lane-dense stores.
    w1 = w1_ref[...]; b1 = b1_ref[...]
    w2 = w2_ref[...]; b2 = b2_ref[...]
    w3 = w3_ref[...]; b3 = b3_ref[...]
    n_chunks = x_ref.shape[0] // CHUNK  # TB is a multiple of CHUNK by construction

    def body(c, carry):
        start = pl.multiple_of(c * CHUNK, CHUNK)
        xc = x_ref[pl.ds(start, CHUNK), :]                       # (CHUNK, state_dim)
        o_ref[:, pl.ds(start, CHUNK)] = _mlp_cols(xc, w1, b1, w2, b2, w3, b3)
        return carry

    lax.fori_loop(0, n_chunks, body, 0)


def actor_forward(state, params, *, tile_b=8192):
    """state: (B, state_dim) f32 -> (B, action_dim) f32."""
    w1, b1, w2, b2, w3, b3 = params
    B, state_dim = state.shape
    action_dim = w3.shape[0]

    weight_args = (w1, b1, w2, b2, w3, b3)
    w_specs = [pl.BlockSpec(a.shape, lambda i: (0, 0)) for a in weight_args]

    if B <= SMALL_MAX:
        # Fast path: one grid step, full-array blocks, zero wrapper data movement.
        outT = pl.pallas_call(
            actor_kernel_small,
            out_shape=jax.ShapeDtypeStruct((action_dim, B), jnp.float32),
            grid=(1,),
            in_specs=[pl.BlockSpec((B, state_dim), lambda i: (0, 0))] + w_specs,
            out_specs=pl.BlockSpec((action_dim, B), lambda i: (0, 0)),
        )(state, *weight_args)
    else:
        # Large path: pad batch to a multiple of CHUNK, pick a CHUNK-multiple tile,
        # force >=2 grid steps when possible so v7x megacore gets both TCs working.
        n_chunks_total = pl.cdiv(B, CHUNK)
        max_chunks = max(1, tile_b // CHUNK)
        num_tiles = pl.cdiv(n_chunks_total, max_chunks)
        if n_chunks_total >= 2:
            num_tiles = max(num_tiles, 2)
        chunks_per_tile = pl.cdiv(n_chunks_total, num_tiles)
        TB = chunks_per_tile * CHUNK
        B_pad = num_tiles * TB

        xp = state if B_pad == B else jnp.pad(state, ((0, B_pad - B), (0, 0)))

        outT = pl.pallas_call(
            actor_kernel_tiled,
            out_shape=jax.ShapeDtypeStruct((action_dim, B_pad), jnp.float32),
            grid=(num_tiles,),
            in_specs=[pl.BlockSpec((TB, state_dim), lambda i: (i, 0))] + w_specs,
            out_specs=pl.BlockSpec((action_dim, TB), lambda i: (0, i)),
            compiler_params=pltpu.CompilerParams(
                dimension_semantics=("parallel",)),
        )(xp, *weight_args)

    if action_dim == 1:
        # (1, B_pad) -> (B, 1): pure linear reshape + slice, no transpose op.
        return outT.reshape(-1)[:B].reshape(B, 1)
    return outT[:, :B].T  # generic fallback for action_dim > 1


def init_params(key, state_dim, action_dim):
    """Deterministic synthetic params matching nn.Linear shapes (weight = (out, in))."""
    ks = jax.random.split(key, 6)

    def lin(kw, kb, fan_in, fan_out):
        bound = 1.0 / jnp.sqrt(fan_in)
        w = jax.random.uniform(kw, (fan_out, fan_in), jnp.float32, -bound, bound)
        b = jax.random.uniform(kb, (fan_out, 1), jnp.float32, -bound, bound)
        return w, b

    w1, b1 = lin(ks[0], ks[1], state_dim, 32)
    w2, b2 = lin(ks[2], ks[3], 32, 16)
    w3, b3 = lin(ks[4], ks[5], 16, action_dim)
    return (w1, b1, w2, b2, w3, b3)


def actor_reference(state, params):
    w1, b1, w2, b2, w3, b3 = params
    h = jnp.maximum(state @ w1.T + b1.T, 0.0)
    h = jnp.maximum(h @ w2.T + b2.T, 0.0)
    return jnp.tanh(h @ w3.T + b3.T) * ACTION_RANGE


if __name__ == "__main__":
    state_dim = 3      # Pendulum observation: (cos θ, sin θ, θ̇)
    action_dim = 1

    key = jax.random.PRNGKey(0)
    kp, kx1, kx2, kx3 = jax.random.split(key, 4)
    params = init_params(kp, state_dim, action_dim)

    # Small batch -> fast path (single block, no pad/transpose).
    state_small = jax.random.normal(kx1, (8, state_dim), jnp.float32)
    out_small = actor_forward(state_small, params)
    jax.block_until_ready(out_small)
    ref_small = actor_reference(state_small, params)
    assert out_small.shape == (8, action_dim)
    assert jnp.allclose(out_small, ref_small, atol=1e-4), "mismatch vs reference (B=8)"

    # Non-multiple-of-CHUNK batch -> large path with row padding (padded cols discarded).
    state_mid = jax.random.normal(kx3, (700, state_dim), jnp.float32)
    out_mid = actor_forward(state_mid, params)
    jax.block_until_ready(out_mid)
    ref_mid = actor_reference(state_mid, params)
    assert out_mid.shape == (700, action_dim)
    assert jnp.allclose(out_mid, ref_mid, atol=1e-4), "mismatch vs reference (B=700)"

    # Larger batch exercising the multi-tile parallel grid (2 tiles x 512 columns).
    state_big = jax.random.normal(kx2, (1024, state_dim), jnp.float32)
    out_big = actor_forward(state_big, params)
    jax.block_until_ready(out_big)
    ref_big = actor_reference(state_big, params)
    assert out_big.shape == (1024, action_dim)
    assert jnp.allclose(out_big, ref_big, atol=1e-4), "mismatch vs reference (B=1024)"

    print("KERNEL_OK")
</pallas_src>

<mosaic_0001>
module attributes {stable_mosaic.version = 11 : i64} {
  func.func @actor_kernel_small(%arg0: i32, %arg1: memref<8x3xf32, #tpu.memory_space<vmem>>, %arg2: memref<32x3xf32, #tpu.memory_space<vmem>>, %arg3: memref<32x1xf32, #tpu.memory_space<vmem>>, %arg4: memref<16x32xf32, #tpu.memory_space<vmem>>, %arg5: memref<16x1xf32, #tpu.memory_space<vmem>>, %arg6: memref<1x16xf32, #tpu.memory_space<vmem>>, %arg7: memref<1x1xf32, #tpu.memory_space<vmem>>, %arg8: memref<1x8xf32, #tpu.memory_space<vmem>>) attributes {dimension_semantics = [#tpu.dimension_semantics<arbitrary>], iteration_bounds = array<i64: 1>, scalar_prefetch = 0 : i64, scratch_operands = 0 : i64, tpu.core_type = #tpu.core_type<tc>, window_params = [{pipeline_mode = #tpu.pipeline_mode<synchronous>, transform_indices = @transform_0, window_bounds = array<i64: 8, 3>}, {pipeline_mode = #tpu.pipeline_mode<synchronous>, transform_indices = @transform_1, window_bounds = array<i64: 32, 3>}, {pipeline_mode = #tpu.pipeline_mode<synchronous>, transform_indices = @transform_2, window_bounds = array<i64: 32, 1>}, {pipeline_mode = #tpu.pipeline_mode<synchronous>, transform_indices = @transform_3, window_bounds = array<i64: 16, 32>}, {pipeline_mode = #tpu.pipeline_mode<synchronous>, transform_indices = @transform_4, window_bounds = array<i64: 16, 1>}, {pipeline_mode = #tpu.pipeline_mode<synchronous>, transform_indices = @transform_5, window_bounds = array<i64: 1, 16>}, {pipeline_mode = #tpu.pipeline_mode<synchronous>, transform_indices = @transform_6, window_bounds = array<i64: 1, 1>}, {pipeline_mode = #tpu.pipeline_mode<synchronous>, transform_indices = @transform_7, window_bounds = array<i64: 1, 8>}]} {
    %c0 = arith.constant 0 : index
    %c0_0 = arith.constant 0 : index
    %0 = vector.load %arg1[%c0, %c0_0] : memref<8x3xf32, #tpu.memory_space<vmem>>, vector<8x3xf32>
    %c0_1 = arith.constant 0 : index
    %c0_2 = arith.constant 0 : index
    %1 = vector.load %arg2[%c0_1, %c0_2] : memref<32x3xf32, #tpu.memory_space<vmem>>, vector<32x3xf32>
    %c0_3 = arith.constant 0 : index
    %c0_4 = arith.constant 0 : index
    %2 = vector.load %arg3[%c0_3, %c0_4] : memref<32x1xf32, #tpu.memory_space<vmem>>, vector<32x1xf32>
    %c0_5 = arith.constant 0 : index
    %c0_6 = arith.constant 0 : index
    %3 = vector.load %arg4[%c0_5, %c0_6] : memref<16x32xf32, #tpu.memory_space<vmem>>, vector<16x32xf32>
    %c0_7 = arith.constant 0 : index
    %c0_8 = arith.constant 0 : index
    %4 = vector.load %arg5[%c0_7, %c0_8] : memref<16x1xf32, #tpu.memory_space<vmem>>, vector<16x1xf32>
    %c0_9 = arith.constant 0 : index
    %c0_10 = arith.constant 0 : index
    %5 = vector.load %arg6[%c0_9, %c0_10] : memref<1x16xf32, #tpu.memory_space<vmem>>, vector<1x16xf32>
    %c0_11 = arith.constant 0 : index
    %c0_12 = arith.constant 0 : index
    %6 = vector.load %arg7[%c0_11, %c0_12] : memref<1x1xf32, #tpu.memory_space<vmem>>, vector<1x1xf32>
    %cst = arith.constant dense<0.000000e+00> : vector<32x8xf32>
    %7 = tpu.matmul %1, %0, %cst {dimension_numbers = #tpu.dot_dimension_numbers<[1], [1], [0], [0], [0, 0, 1, 0], [], []>} : vector<32x3xf32>, vector<8x3xf32>, vector<32x8xf32> -> vector<32x8xf32>
    %8 = vector.broadcast %2 : vector<32x1xf32> to vector<32x8xf32>
    %9 = arith.addf %7, %8 : vector<32x8xf32>
    %cst_13 = arith.constant 0.000000e+00 : f32
    %10 = vector.broadcast %cst_13 : f32 to vector<32x8xf32>
    %11 = arith.maximumf %9, %10 : vector<32x8xf32>
    %cst_14 = arith.constant dense<0.000000e+00> : vector<16x8xf32>
    %12 = tpu.matmul %3, %11, %cst_14 {dimension_numbers = #tpu.dot_dimension_numbers<[1], [0], [0], [1], [0, 0, 1, 1], [], []>} : vector<16x32xf32>, vector<32x8xf32>, vector<16x8xf32> -> vector<16x8xf32>
    %13 = vector.broadcast %4 : vector<16x1xf32> to vector<16x8xf32>
    %14 = arith.addf %12, %13 : vector<16x8xf32>
    %cst_15 = arith.constant 0.000000e+00 : f32
    %15 = vector.broadcast %cst_15 : f32 to vector<16x8xf32>
    %16 = arith.maximumf %14, %15 : vector<16x8xf32>
    %cst_16 = arith.constant dense<0.000000e+00> : vector<1x8xf32>
    %17 = tpu.matmul %5, %16, %cst_16 {dimension_numbers = #tpu.dot_dimension_numbers<[1], [0], [0], [1], [0, 0, 1, 1], [], []>} : vector<1x16xf32>, vector<16x8xf32>, vector<1x8xf32> -> vector<1x8xf32>
    %18 = vector.broadcast %6 : vector<1x1xf32> to vector<1x8xf32>
    %19 = arith.addf %17, %18 : vector<1x8xf32>
    %20 = math.tanh %19 : vector<1x8xf32>
    %cst_17 = arith.constant 2.500000e+00 : f32
    %21 = vector.broadcast %cst_17 : f32 to vector<1x8xf32>
    %22 = arith.mulf %20, %21 : vector<1x8xf32>
    %c0_18 = arith.constant 0 : index
    %c0_19 = arith.constant 0 : index
    %23 = vector.load %arg8[%c0_18, %c0_19] : memref<1x8xf32, #tpu.memory_space<vmem>>, vector<1x8xf32>
    tpu.vector_store %arg8[%c0_18, %c0_19], %22 {strides = array<i32>} : memref<1x8xf32, #tpu.memory_space<vmem>>, vector<1x8xf32>,
    return
  }
  func.func @transform_0(%arg0: i32) -> (i32, i32) {
    %c0_i32 = arith.constant 0 : i32
    %c0_i32_0 = arith.constant 0 : i32
    %c0_i32_1 = arith.constant 0 : i32
    return %c0_i32, %c0_i32_0 : i32, i32
  }
  func.func @transform_1(%arg0: i32) -> (i32, i32) {
    %c0_i32 = arith.constant 0 : i32
    %c0_i32_0 = arith.constant 0 : i32
    %c0_i32_1 = arith.constant 0 : i32
    return %c0_i32, %c0_i32_0 : i32, i32
  }
  func.func @transform_2(%arg0: i32) -> (i32, i32) {
    %c0_i32 = arith.constant 0 : i32
    %c0_i32_0 = arith.constant 0 : i32
    %c0_i32_1 = arith.constant 0 : i32
    return %c0_i32, %c0_i32_0 : i32, i32
  }
  func.func @transform_3(%arg0: i32) -> (i32, i32) {
    %c0_i32 = arith.constant 0 : i32
    %c0_i32_0 = arith.constant 0 : i32
    %c0_i32_1 = arith.constant 0 : i32
    return %c0_i32, %c0_i32_0 : i32, i32
  }
  func.func @transform_4(%arg0: i32) -> (i32, i32) {
    %c0_i32 = arith.constant 0 : i32
    %c0_i32_0 = arith.constant 0 : i32
    %c0_i32_1 = arith.constant 0 : i32
    return %c0_i32, %c0_i32_0 : i32, i32
  }
  func.func @transform_5(%arg0: i32) -> (i32, i32) {
    %c0_i32 = arith.constant 0 : i32
    %c0_i32_0 = arith.constant 0 : i32
    %c0_i32_1 = arith.constant 0 : i32
    return %c0_i32, %c0_i32_0 : i32, i32
  }
  func.func @transform_6(%arg0: i32) -> (i32, i32) {
    %c0_i32 = arith.constant 0 : i32
    %c0_i32_0 = arith.constant 0 : i32
    %c0_i32_1 = arith.constant 0 : i32
    return %c0_i32, %c0_i32_0 : i32, i32
  }
  func.func @transform_7(%arg0: i32) -> (i32, i32) {
    %c0_i32 = arith.constant 0 : i32
    %c0_i32_0 = arith.constant 0 : i32
    %c0_i32_1 = arith.constant 0 : i32
    return %c0_i32, %c0_i32_0 : i32, i32
  }
}

</mosaic_0001>

<bundles_post_ra>
// kernel: tpu_custom_call.1
= control target key start
LH: loop header
LB: loop body
LE: loop exit
PB: predicated region body
PF: predicated region fallthrough
CT: control target
= control target key end

     0   :  { %s566_s0 = inlined_call_operand.vmem [shape: f32[8,3], index: 0, kind: input, shape index: {}]   ;;  %s567_s1 = inlined_call_operand.vmem [shape: f32[32,3], index: 1, kind: input, shape index: {}]   ;;  %s568_s2 = inlined_call_operand.vmem [shape: f32[32,1], index: 2, kind: input, shape index: {}]   ;;  %s569_s3 = inlined_call_operand.vmem [shape: f32[16,32], index: 3, kind: input, shape index: {}]   ;;  %s570_s4 = inlined_call_operand.vmem [shape: f32[16,1], index: 4, kind: input, shape index: {}]   ;;  %s571_s5 = inlined_call_operand.vmem [shape: f32[1,16], index: 5, kind: input, shape index: {}]   ;;  %s572_s6 = inlined_call_operand.<no memory space> [shape: f32[1,1], index: 6, kind: input, shape index: {}]   ;;  %s573_s7 = inlined_call_operand.hbm [shape: f32[1,8], index: 7, kind: output, shape index: {}]  }
   0x1   :  { %v12_v0 = vstv %s572_s6 }
   0x2   :  { %13 = vst [vmem:[#allocation2] sm:$0x1] %v12_v0 }
   0x3   :  { %v29_v1 = vld [vmem:[%s566_s0] sm:$0xff]  ;;  %vm64_vm0 = vcmask 23552   ;;  %v31_v4 = vld [vmem:[%s567_s1 + $0x8] sm:$0xff]  ;;  %v456_v5 = vmov 0   ;;  %v36_v6 = vld [vmem:[%s568_s2 + $0x10] sm:$0xff] }
   0x4   :  { %v30_v2 = vld [vmem:[%s567_s1] sm:$0xff]  ;;  %386 = vmatprep.subr.msk.mxu0 %vm64_vm0, %v29_v1  ;;  %428 = vset.pattern.permute.xlu0 %v456_v5  ;;  %v32_v7 = vld [vmem:[%s567_s1 + $0x10] sm:$0xff]  ;;  %v35_v8 = vld [vmem:[%s568_s2 + $0x8] sm:$0xff] }
   0x5   :  { %388 = vmatprep.mubr.msk.f32.mxu0 %vm64_vm0, %v30_v2  ;;  %v34_v3 = vld [vmem:[%s568_s2] sm:$0xff]  ;;  %387 = vmatpush3.xpose.msk.msra.mxu0 %vm64_vm0, %v29_v1 }
   0x6   :  { %46 = vperm.xlu0 %428, %v34_v3   ;;  %429 = vset.pattern.permute.xlu1 %v456_v5 }
   0x7   :  { %56 = vperm.xlu1 %429, %v36_v6  }
   0x8   :  { %14 = vsyncpa [#allocation4], 0  ;;  %389 = vmatmul.mubr.msk.f32.vlgmr.msra.gmra.mrb[0].mxu0 %vm64_vm0, %v31_v4  ;;  %v37_v9 = vld [vmem:[%s568_s2 + $0x18] sm:$0xff]  ;;  %v40_v11 = vld [vmem:[%s570_s4] sm:$0xff]  ;;  %vm179_vm1 = vcmask 261120   ;;  %v457_v34 = vmov 0.0|0.0   ;;  %v268_v46 = vlaneseq }
   0x9   :  { %391 = vmatprep.mubr.msk.f32.mxu0 %vm64_vm0, %v32_v7  ;;  %v33_v10 = vld [vmem:[%s567_s1 + $0x18] sm:$0xff]  ;;  %v41_v12 = vld [vmem:[%s570_s4 + $0x8] sm:$0xff]  ;;  %v43_v13 = vld [vmem:[#allocation2] sm:$0x1]  ;;  %420 = vmatprep.subr.bf16.mxu0 %v457_v34  ;;  %vm458_vm2 = vmmov 0   ;;  %v459_v35 = vmov 0.0  }
   0xa   :  { %51 = vperm.xlu0 %428, %v35_v8   ;;  %v38_v14 = vld [vmem:[%s569_s3] sm:$0xff]  ;;  %v39_v33 = vld [vmem:[%s569_s3 + $0x8] sm:$0xff]  ;;  %vm272_vm3 = vcmask 130048   ;;  %v269_v47 = vshrl.u32 %v268_v46, 7  ;;  %s460_s3 = smov [#allocation3]   ;;  %vm348_vm4 = vcmask 57344  }
   0xb   :  { %61 = vperm.xlu1 %429, %v37_v9   ;;  %402 = vmatprep.mubr.msk.f32.mxu1 %vm179_vm1, %v38_v14  ;;  %v42_v45 = vld [vmem:[%s571_s5] sm:$0x1]  ;;  %s356_s26 = sshll.u32 %s460_s3, 4  ;;  %s357_s26 = int_to_ptr.vmem [resolvable:$true] %s356_s26 }
   0xc   :  { %392 = vmatmul.mubr.msk.f32.gmra.mrb[2].mxu0 %vm64_vm0, %v33_v10  ;;  %v270_v48 = vsub.s32 0, %v269_v47  ;;  %s432_s27 = scalar_lea.vmem %s357_s26, 16  ;;  %s436_s5 = scalar_lea.vmem %s357_s26, 32 }
   0xd   :  { %409 = vmatprep.mubr.msk.f32.mxu0 %vm458_vm2, %v459_v35  ;;  %p433_p0 = scmp.ne.s32.totalorder %s357_s26, %s432_s27  ;;  %p437_p1 = scmp.lt.s32.totalorder %s357_s26, %s357_s26 }
   0xe   :  { %171 = vperm.xlu0 %428, %v40_v11   ;;  %p438_p2 = scmp.lt.s32.totalorder %s436_s5, %s432_s27 }
   0xf   :  { %176 = vperm.xlu1 %429, %v41_v12  }
  0x10   :  { %p439_p3 = por %p438_p2, %p437_p1 }
  0x12   :  { %265 = vperm.xlu0 %428, %v43_v13   ;;  %p440_p4 = pnand %p439_p3, %p433_p0 }
  0x85   :  { %v47_v15 = vpop.permute.xlu0 %46 }
  0x86   :  { %v57_v16 = vpop.permute.xlu1 %56 }
  0x89   :  { %v52_v17 = vpop.permute.xlu0 %51 }
  0x8a   :  { %v62_v23 = vpop.permute.xlu1 %61 }
  0x8d   :  { %v172_v38 = vpop.permute.xlu0 %171 }
  0x8e   :  { %v177_v36 = vpop.permute.xlu1 %176 }
  0x91   :  { %v266_v49 = vpop.permute.xlu0 %265 }
  0x92   :  { %v271_v50 = vrot.slane %v266_v49, %v270_v48 }
  0xdb   :  { %v390_v18 = vpop.f32.mrb[0].mxu0 }
  0xdc   :  { %v152_v19 = vadd.f32 %v390_v18, %v52_v17  ;;  %v146_v20 = vpop.f32.mrb[1].mxu0 }
  0xdd   :  { %v147_v21 = vadd.f32 %v146_v20, %v47_v15 }
  0xde   :  { %v166_v22 = vmax.f32 %v152_v19, 0.0 }
  0xdf   :  { %v165_v24 = vmax.f32 %v147_v21, 0.0  ;;  %v393_v25 = vpop.f32.mrb[2].mxu0 }
  0xe0   :  { %v162_v26 = vadd.f32 %v393_v25, %v62_v23  ;;  %v156_v27 = vpop.f32.mrb[3].mxu0 }
  0xe1   :  { %v157_v28 = vadd.f32 %v156_v27, %v57_v16  ;;  %v412_v29 = vpack.c.bf16 %v166_v22, %v165_v24 }
  0xe2   :  { %v168_v30 = vmax.f32 %v162_v26, 0.0 }
  0xe3   :  { %v167_v31 = vmax.f32 %v157_v28, 0.0  ;;  %413 = vmatprep.subr.bf16.mxu1 %v412_v29 }
  0xe4   :  { %415 = vmatpush3.bf16.msra.mxu1 %v412_v29 }
  0xe5   :  { %v416_v32 = vpack.c.bf16 %v168_v30, %v167_v31 }
  0xe7   :  { %417 = vmatprep.subr.bf16.mxu1 %v416_v32 }
  0xe8   :  { %419 = vmatpush3.bf16.msra.mxu1 %v416_v32 }
  0xeb   :  { %403 = vmatmul.mubr.msk.f32.vlgmr.msra.gmra.mrb[0].mxu1 %vm179_vm1, %v39_v33 }
 0x1be   :  { %v404_v37 = vpop.f32.mrb[0].mxu1 }
 0x1bf   :  { %v258_v39 = vadd.f32 %v404_v37, %v177_v36  ;;  %v252_v40 = vpop.f32.mrb[1].mxu1 }
 0x1c0   :  { %v253_v41 = vadd.f32 %v252_v40, %v172_v38 }
 0x1c1   :  { %v262_v42 = vmax.f32 %v258_v39, 0.0 }
 0x1c2   :  { %v261_v43 = vmax.f32 %v253_v41, 0.0 }
 0x1c4   :  { %v421_v44 = vpack.c.bf16 %v262_v42, %v261_v43 }
 0x1c6   :  { %422 = vmatpush3.bf16.msra.mxu0 %v421_v44 }
 0x1c9   :  { %410 = vmatmul.mubr.msk.f32.vlgmr.msra.gmra.mrb[4].mxu0 %vm272_vm3, %v42_v45 }
 0x29c   :  { %v342_v51 = vpop.f32.mrb[4].mxu0 }
 0x29d   :  { %v343_v52 = vadd.f32 %v342_v51, %v271_v50  ;;  %v411_v53 = vpop.f32.mrb[5].mxu0 }
 0x29f   :  { %430 = vtanh.f32 %v343_v52 }
 0x2a9   :  { %v431_v54 = vpop.eup %430 }
 0x2aa   :  { %v347_v55 = vmul.f32 2.5, %v431_v54 }
 0x2ac   :  { %349 = vst.msk [vmem:[#allocation3] sm:$0x1] %vm348_vm4, %v347_v55 }
 0x2ad   :  { %443 = shalt.err (!%p440_p4)
}
 0x2ae   :  { %s444_s30 = scalar_lea.hbm %s573_s7, 16 }
 0x2af   :  { %p445_p5 = scmp.ne.s32.totalorder %s573_s7, %s444_s30  ;;  %p448_p6 = scmp.lt.u32.totalorder %s444_s30, %s573_s7 }
 0x2b1   :  { %p450_p7 = pnand %p448_p6, %p445_p5 }
 0x2b3   :  { %453 = shalt.err (!%p450_p7)
}
 0x2b4   :  { %359 = dma.vmem_to_hbm [thread:$0]  %s357_s26, 16, %s573_s7, [#allocation4]  }
 0x2b5   :  { %454 = dma.done.wait [#allocation4], 16  }
 0x2b6   :  { %455 = vsyncadd [#allocation4], 4294967280 }
 0x2b7   :  { %363 = vsyncpa [#allocation4], 1 }

</bundles_post_ra>
